<compile_context>
chip_gen: v7x
topology: tpu7x:2x2x1
jax: 0.10.0
libtpu: 0.0.40
codegen_flags: <defaults>
</compile_context>

<pallas_src>
import jax
import jax.numpy as jnp
from jax import lax
from jax.experimental import pallas as pl
from jax.experimental.pallas import tpu as pltpu


def _round_up(x, m):
    return (x + m - 1) // m * m


# VMEM budget for matmul tiles (double-buffered inputs/outputs + f32 scratch).
# Kept well under v7x's 64 MiB per-TensorCore physical VMEM.
_VMEM_TILE_BUDGET = 32 * 1024 * 1024
_VMEM_LIMIT_BYTES = 48 * 1024 * 1024


# ----------------------------------------------------------------------------
# Fused matmul kernel: out = maybe_relu((A @ B) + bias [+ residual])
# Grid = (M tiles, N tiles, K tiles); K is innermost ("arbitrary").
# A/B are bf16 (BN scale pre-folded into B), accumulation is f32 in a VMEM
# scratch, output is written once (last K step) as bf16.
# ----------------------------------------------------------------------------
def _mm_kernel(relu, has_res, multi_k):
    def kernel(*refs):
        if multi_k:
            acc_ref = refs[-1]
            refs = refs[:-1]
        if has_res:
            a_ref, b_ref, t_ref, r_ref, o_ref = refs
        else:
            a_ref, b_ref, t_ref, o_ref = refs
            r_ref = None

        def epilogue(acc):
            y = acc + t_ref[...]
            if r_ref is not None:
                y = y + r_ref[...].astype(jnp.float32)
            if relu:
                y = jnp.maximum(y, 0.0)
            o_ref[...] = y.astype(o_ref.dtype)

        if not multi_k:
            # Single K step: no accumulator round-trip, no init/finalize branches.
            epilogue(jnp.dot(a_ref[...], b_ref[...],
                             preferred_element_type=jnp.float32))
        else:
            k = pl.program_id(2)

            @pl.when(k == 0)
            def _():
                acc_ref[...] = jnp.zeros_like(acc_ref)

            acc_ref[...] += jnp.dot(a_ref[...], b_ref[...],
                                    preferred_element_type=jnp.float32)

            @pl.when(k == pl.num_programs(2) - 1)
            def _():
                epilogue(acc_ref[...])

    return kernel


def _pick_tiles(M, Kp, Np, has_res):
    Mp = _round_up(M, 8)
    if Mp <= 1024:
        tm = Mp
    else:
        tm = 512
        Mp = _round_up(Mp, tm)

    if Np % 512 == 0:
        tn = 512
    elif Np % 256 == 0:
        tn = 256
    else:
        tn = 128

    def footprint(tk):
        f = 2 * tm * tk * 2          # A bf16, double-buffered
        f += 2 * tk * tn * 2         # B bf16, double-buffered
        f += 2 * tn * 4              # bias f32
        f += 2 * tm * tn * 2         # output bf16, double-buffered
        f += tm * tn * 4             # f32 accumulator scratch
        if has_res:
            f += 2 * tm * tn * 2     # residual bf16, double-buffered
        return f

    tk = 128
    for cand in (Kp, 4096, 2048, 1024, 512, 256, 128):
        if cand <= Kp and Kp % cand == 0 and footprint(cand) <= _VMEM_TILE_BUDGET:
            tk = cand
            break

    # Megacore (v7x, 2 TCs): split M when the grid would otherwise be a
    # single parallel tile and M is large enough to be worth splitting.
    if Mp // tm == 1 and Np // tn == 1 and Mp >= 512 and (Mp // 2) % 8 == 0:
        tm = Mp // 2
    return Mp, tm, tn, tk


def matmul_affine(a, b_packed, bias_p, *, relu, residual=None):
    """a: (M, Kp) bf16 (K already padded to match b_packed);
    b_packed: (Kp, Np) bf16 with BN scale folded in; bias_p: (1, Np) f32;
    residual: (M, oc) bf16 or None.  Returns (M, Np) bf16."""
    M, Kp = a.shape
    Kb, Np = b_packed.shape
    assert Kp == Kb, (Kp, Kb)
    has_res = residual is not None
    Mp, tm, tn, tk = _pick_tiles(M, Kp, Np, has_res)
    multi_k = (Kp // tk) > 1

    ap = a if Mp == M else jnp.pad(a, ((0, Mp - M), (0, 0)))

    operands = [ap, b_packed, bias_p]
    in_specs = [
        pl.BlockSpec((tm, tk), lambda i, j, k: (i, k)),
        pl.BlockSpec((tk, tn), lambda i, j, k: (k, j)),
        pl.BlockSpec((1, tn), lambda i, j, k: (0, j)),
    ]
    if has_res:
        rp = residual.astype(jnp.bfloat16)
        if rp.shape != (Mp, Np):
            rp = jnp.pad(rp, ((0, Mp - rp.shape[0]), (0, Np - rp.shape[1])))
        operands.append(rp)
        # Block index constant over K -> resident (tm, tn) buffer, read only
        # in the epilogue.
        in_specs.append(pl.BlockSpec((tm, tn), lambda i, j, k: (i, j)))

    scratch = [pltpu.VMEM((tm, tn), jnp.float32)] if multi_k else []

    out = pl.pallas_call(
        _mm_kernel(relu, has_res, multi_k),
        out_shape=jax.ShapeDtypeStruct((Mp, Np), jnp.bfloat16),
        grid_spec=pltpu.PrefetchScalarGridSpec(
            num_scalar_prefetch=0,
            grid=(Mp // tm, Np // tn, Kp // tk),
            in_specs=in_specs,
            out_specs=pl.BlockSpec((tm, tn), lambda i, j, k: (i, j)),
            scratch_shapes=scratch,
        ),
        compiler_params=pltpu.CompilerParams(
            dimension_semantics=("parallel", "parallel", "arbitrary"),
            vmem_limit_bytes=_VMEM_LIMIT_BYTES),
    )(*operands)
    return out if Mp == M else out[:M]


# ----------------------------------------------------------------------------
# Convolution = im2col (bf16 glue, K-pad folded into the concat) + fused
# Pallas matmul.
# ----------------------------------------------------------------------------
def _im2col(x, kh, kw, stride, pad, kp):
    N, H, W, C = x.shape
    if pad:
        x = jnp.pad(x, ((0, 0), (pad, pad), (pad, pad), (0, 0)))
    OH = (H + 2 * pad - kh) // stride + 1
    OW = (W + 2 * pad - kw) // stride + 1
    K = kh * kw * C
    if kh == 1 and kw == 1 and stride == 1:
        patches = x
        if kp != K:
            patches = jnp.pad(patches, ((0, 0), (0, 0), (0, 0), (0, kp - K)))
        return patches.reshape(N * OH * OW, kp), (N, OH, OW)
    cols = []
    for i in range(kh):
        for j in range(kw):
            cols.append(x[:, i:i + stride * (OH - 1) + 1:stride,
                          j:j + stride * (OW - 1) + 1:stride, :])
    if kp != K:
        cols.append(jnp.zeros((N, OH, OW, kp - K), x.dtype))
    patches = jnp.concatenate(cols, axis=-1)            # (N, OH, OW, Kp)
    return patches.reshape(N * OH * OW, kp), (N, OH, OW)


def conv_bn(x, layer, *, relu, residual=None):
    oc = layer['oc']
    patches, (N, OH, OW) = _im2col(x.astype(jnp.bfloat16), layer['kh'],
                                   layer['kw'], layer['stride'], layer['pad'],
                                   layer['kp'])
    res2d = None
    if residual is not None:
        res2d = residual.reshape(N * OH * OW, oc).astype(jnp.bfloat16)
    out = matmul_affine(patches, layer['w'], layer['bias'],
                        relu=relu, residual=res2d)
    return out[:, :oc].reshape(N, OH, OW, oc)


# ----------------------------------------------------------------------------
# MaxPool 3x3 / stride 2 / pad 1 (bf16 in, bf16 out).
# Space-to-depth split (even/odd rows x even/odd cols) in glue turns every
# stride-2 tap into a unit-stride slice; the kernel loads the four quads,
# upcasts once, and takes the running max of the 9 taps per image.
# ----------------------------------------------------------------------------
def _maxpool_kernel(oh, ow):
    def kernel(ee_ref, eo_ref, oe_ref, oo_ref, o_ref):
        ee = ee_ref[0].astype(jnp.float32)
        eo = eo_ref[0].astype(jnp.float32)
        oe = oe_ref[0].astype(jnp.float32)
        oo = oo_ref[0].astype(jnp.float32)

        def tap(arr, dh, dw):
            return arr[dh:dh + oh, dw:dw + ow, :]

        m = tap(ee, 0, 0)
        for arr, dh, dw in ((eo, 0, 0), (ee, 0, 1),
                            (oe, 0, 0), (oo, 0, 0), (oe, 0, 1),
                            (ee, 1, 0), (eo, 1, 0), (ee, 1, 1)):
            m = jnp.maximum(m, tap(arr, dh, dw))
        o_ref[0] = m.astype(o_ref.dtype)

    return kernel


def maxpool_3x3_s2(x):
    N, H, W, C = x.shape
    x = x.astype(jnp.bfloat16)
    xp = jnp.pad(x, ((0, 0), (1, 1), (1, 1), (0, 0)),
                 constant_values=-jnp.inf)
    OH = (H + 2 - 3) // 2 + 1
    OW = (W + 2 - 3) // 2 + 1
    quads = (xp[:, 0::2, 0::2, :], xp[:, 0::2, 1::2, :],
             xp[:, 1::2, 0::2, :], xp[:, 1::2, 1::2, :])
    in_specs = [pl.BlockSpec((1,) + q.shape[1:], lambda n: (n, 0, 0, 0))
                for q in quads]
    out = pl.pallas_call(
        _maxpool_kernel(OH, OW),
        out_shape=jax.ShapeDtypeStruct((N, OH, OW, C), jnp.bfloat16),
        grid_spec=pltpu.PrefetchScalarGridSpec(
            num_scalar_prefetch=0,
            grid=(N,),
            in_specs=in_specs,
            out_specs=pl.BlockSpec((1, OH, OW, C), lambda n: (n, 0, 0, 0)),
        ),
        compiler_params=pltpu.CompilerParams(dimension_semantics=("parallel",)),
    )(*quads)
    return out


# ----------------------------------------------------------------------------
# Global average pool + L2 normalize (F.normalize(dim=1), eps=1e-12), one
# image per grid step, f32 math + rsqrt on the EUP.
# ----------------------------------------------------------------------------
def _pool_norm_kernel(inv_hw):
    def kernel(x_ref, o_ref):
        x = x_ref[0].astype(jnp.float32)                     # (HW, C)
        s = jnp.sum(x, axis=0, keepdims=True) * inv_hw       # (1, C)
        ss = jnp.sum(s * s, axis=-1, keepdims=True)
        # 1/max(||s||, 1e-12) == rsqrt(max(||s||^2, 1e-24))
        o_ref[0] = s * lax.rsqrt(jnp.maximum(ss, 1e-24))
    return kernel


def avgpool_l2norm(x):
    N, H, W, C = x.shape
    HW = H * W
    assert C % 128 == 0, C
    xr = x.reshape(N, HW, C)
    out = pl.pallas_call(
        _pool_norm_kernel(1.0 / float(HW)),
        out_shape=jax.ShapeDtypeStruct((N, 1, C), jnp.float32),
        grid_spec=pltpu.PrefetchScalarGridSpec(
            num_scalar_prefetch=0,
            grid=(N,),
            in_specs=[pl.BlockSpec((1, HW, C), lambda n: (n, 0, 0))],
            out_specs=pl.BlockSpec((1, 1, C), lambda n: (n, 0, 0)),
        ),
        compiler_params=pltpu.CompilerParams(dimension_semantics=("parallel",)),
    )(xr)
    return out.reshape(N, C)


# ----------------------------------------------------------------------------
# Deterministic parameter construction (resnet18 backbone, fc removed)
# ----------------------------------------------------------------------------
def build_params(key):
    keys = iter(jax.random.split(key, 128))

    def conv_w(oc, ic, kh, kw):
        std = (2.0 / (ic * kh * kw)) ** 0.5
        return std * jax.random.normal(next(keys), (oc, ic, kh, kw), jnp.float32)

    def bn(c):
        g = 1.0 + 0.1 * jax.random.normal(next(keys), (c,), jnp.float32)
        b = 0.1 * jax.random.normal(next(keys), (c,), jnp.float32)
        m = 0.1 * jax.random.normal(next(keys), (c,), jnp.float32)
        v = 0.9 + 0.2 * jax.random.uniform(next(keys), (c,), jnp.float32)
        return g, b, m, v

    params = {'conv1': (conv_w(64, 3, 7, 7),) + bn(64)}
    blocks = []
    in_c = 64
    for out_c, stride_first in [(64, 1), (128, 2), (256, 2), (512, 2)]:
        for bi in range(2):
            stride = stride_first if bi == 0 else 1
            blk = {'stride': stride,
                   'conv1': (conv_w(out_c, in_c, 3, 3),) + bn(out_c),
                   'conv2': (conv_w(out_c, out_c, 3, 3),) + bn(out_c)}
            if stride != 1 or in_c != out_c:
                blk['ds'] = (conv_w(out_c, in_c, 1, 1),) + bn(out_c)
            blocks.append(blk)
            in_c = out_c
    params['blocks'] = blocks
    return params


# ----------------------------------------------------------------------------
# One-time weight packing: fold BN scale into the weights (in f32, then cast
# to bf16), transpose to (K, OC), pad K/OC to 128-multiples.  Bias stays f32.
# ----------------------------------------------------------------------------
def _pack_conv_bn(w, gamma, beta, mean, var, *, stride, pad, eps=1e-5):
    oc, ic, kh, kw = w.shape
    scale = gamma / jnp.sqrt(var + eps)
    bias = beta - mean * scale
    K = kh * kw * ic
    Kp = _round_up(K, 128)
    Np = _round_up(oc, 128)
    wmat = jnp.transpose(w, (2, 3, 1, 0)).reshape(K, oc) * scale[None, :]
    wp = jnp.zeros((Kp, Np), jnp.bfloat16).at[:K, :oc].set(
        wmat.astype(jnp.bfloat16))
    bp = jnp.zeros((1, Np), jnp.float32).at[0, :oc].set(bias)
    return {'w': wp, 'bias': bp, 'kh': kh, 'kw': kw, 'stride': stride,
            'pad': pad, 'oc': oc, 'kp': Kp}


def prepack_params(params):
    packed = {'conv1': _pack_conv_bn(*params['conv1'], stride=2, pad=3)}
    blocks = []
    for blk in params['blocks']:
        pb = {'conv1': _pack_conv_bn(*blk['conv1'], stride=blk['stride'], pad=1),
              'conv2': _pack_conv_bn(*blk['conv2'], stride=1, pad=1)}
        if 'ds' in blk:
            pb['ds'] = _pack_conv_bn(*blk['ds'], stride=blk['stride'], pad=0)
        blocks.append(pb)
    packed['blocks'] = blocks
    return packed


# ----------------------------------------------------------------------------
# FCResNet18 forward
# ----------------------------------------------------------------------------
def fc_resnet18_forward(packed, x_nchw):
    x = jnp.transpose(x_nchw, (0, 2, 3, 1)).astype(jnp.bfloat16)   # NCHW -> NHWC
    # stem: conv7x7/2 + bn + relu + maxpool3x3/2
    x = conv_bn(x, packed['conv1'], relu=True)
    x = maxpool_3x3_s2(x)
    # 4 layers x 2 BasicBlocks
    for blk in packed['blocks']:
        identity = x
        out = conv_bn(x, blk['conv1'], relu=True)
        if 'ds' in blk:
            identity = conv_bn(x, blk['ds'], relu=False)
        x = conv_bn(out, blk['conv2'], relu=True, residual=identity)
    # adaptive avgpool to 1x1, squeeze, F.normalize(dim=1)
    return avgpool_l2norm(x)                                        # (N, 512)


if __name__ == "__main__":
    key = jax.random.PRNGKey(0)
    pkey, xkey = jax.random.split(key)
    params = build_params(pkey)
    packed = prepack_params(params)
    x = jax.random.normal(xkey, (2, 3, 32, 32), jnp.float32)        # small NCHW input
    feat = fc_resnet18_forward(packed, x)
    feat = jax.block_until_ready(feat)
    assert feat.shape == (2, 512), feat.shape
    assert bool(jnp.all(jnp.isfinite(feat)))
    norms = jnp.sqrt(jnp.sum(feat * feat, axis=1))
    assert bool(jnp.all(jnp.abs(norms - 1.0) < 1e-3))
    print("KERNEL_OK")
</pallas_src>

<mosaic_0001>
module attributes {stable_mosaic.version = 11 : i64} {
  func.func @kernel(%arg0: i32, %arg1: i32, %arg2: i32, %arg3: memref<256x256xbf16, #tpu.memory_space<vmem>>, %arg4: memref<256x128xbf16, #tpu.memory_space<vmem>>, %arg5: memref<1x128xf32, #tpu.memory_space<vmem>>, %arg6: memref<256x128xbf16, #tpu.memory_space<vmem>>) attributes {dimension_semantics = [#tpu.dimension_semantics<parallel>, #tpu.dimension_semantics<parallel>, #tpu.dimension_semantics<arbitrary>], iteration_bounds = array<i64: 2, 1, 1>, scalar_prefetch = 0 : i64, scratch_operands = 0 : i64, tpu.core_type = #tpu.core_type<tc>, window_params = [{transform_indices = @transform_0, window_bounds = array<i64: 256, 256>}, {transform_indices = @transform_1, window_bounds = array<i64: 256, 128>}, {transform_indices = @transform_2, window_bounds = array<i64: 1, 128>}, {transform_indices = @transform_3, window_bounds = array<i64: 256, 128>}]} {
    %c0 = arith.constant 0 : index
    %c0_0 = arith.constant 0 : index
    %0 = vector.load %arg3[%c0, %c0_0] : memref<256x256xbf16, #tpu.memory_space<vmem>>, vector<256x256xbf16>
    %c0_1 = arith.constant 0 : index
    %c0_2 = arith.constant 0 : index
    %1 = vector.load %arg4[%c0_1, %c0_2] : memref<256x128xbf16, #tpu.memory_space<vmem>>, vector<256x128xbf16>
    %cst = arith.constant dense<0.000000e+00> : vector<256x128xf32>
    %2 = tpu.matmul %0, %1, %cst {dimension_numbers = #tpu.dot_dimension_numbers<[1], [0], [0], [1], [0, 0, 1, 1], [], []>} : vector<256x256xbf16>, vector<256x128xbf16>, vector<256x128xf32> -> vector<256x128xf32>
    %c0_3 = arith.constant 0 : index
    %c0_4 = arith.constant 0 : index
    %3 = vector.load %arg5[%c0_3, %c0_4] : memref<1x128xf32, #tpu.memory_space<vmem>>, vector<1x128xf32>
    %4 = vector.broadcast %3 : vector<1x128xf32> to vector<256x128xf32>
    %5 = arith.addf %2, %4 : vector<256x128xf32>
    %cst_5 = arith.constant 0.000000e+00 : f32
    %6 = vector.broadcast %cst_5 : f32 to vector<256x128xf32>
    %7 = arith.maximumf %5, %6 : vector<256x128xf32>
    %8 = arith.truncf %7 : vector<256x128xf32> to vector<256x128xbf16>
    %c0_6 = arith.constant 0 : index
    %c0_7 = arith.constant 0 : index
    %9 = vector.load %arg6[%c0_6, %c0_7] : memref<256x128xbf16, #tpu.memory_space<vmem>>, vector<256x128xbf16>
    tpu.vector_store %arg6[%c0_6, %c0_7], %8 {strides = array<i32>} : memref<256x128xbf16, #tpu.memory_space<vmem>>, vector<256x128xbf16>,
    return
  }
  func.func @transform_0(%arg0: i32, %arg1: i32, %arg2: i32) -> (i32, i32) {
    %c0_i32 = arith.constant 0 : i32
    return %arg0, %arg2 : i32, i32
  }
  func.func @transform_1(%arg0: i32, %arg1: i32, %arg2: i32) -> (i32, i32) {
    %c0_i32 = arith.constant 0 : i32
    return %arg2, %arg1 : i32, i32
  }
  func.func @transform_2(%arg0: i32, %arg1: i32, %arg2: i32) -> (i32, i32) {
    %c0_i32 = arith.constant 0 : i32
    %c0_i32_0 = arith.constant 0 : i32
    return %c0_i32, %arg1 : i32, i32
  }
  func.func @transform_3(%arg0: i32, %arg1: i32, %arg2: i32) -> (i32, i32) {
    %c0_i32 = arith.constant 0 : i32
    return %arg0, %arg1 : i32, i32
  }
}

</mosaic_0001>

<bundles_post_ra>
// kernel: tpu_custom_call.1
= control target key start
LH: loop header
LB: loop body
LE: loop exit
PB: predicated region body
PF: predicated region fallthrough
CT: control target
= control target key end

     0   :  { %8 = vsyncpa [#allocation3], 0  ;;  %s2056_s0 = inlined_call_operand.hbm [shape: bf16[512,256], index: 0, kind: input, shape index: {}]   ;;  %s2057_s1 = inlined_call_operand.hbm [shape: bf16[256,128], index: 1, kind: input, shape index: {}]   ;;  %s2058_s2 = inlined_call_operand.vmem [shape: f32[1,128], index: 2, kind: input, shape index: {}]   ;;  %s2059_s3 = inlined_call_operand.hbm [shape: bf16[512,128], index: 3, kind: output, shape index: {}]  }
   0x1   :  { %10 = vsyncpa [#allocation3 + $0x1], 0 }
   0x2   :  { %11 = vsyncpa [#allocation6], 0 }
   0x3   :  { %12 = vsyncpa [#allocation4], 0 }
   0x4   :  { %14 = vsyncpa [#allocation4 + $0x1], 0  ;;  %s1746_s12 = smov 0   ;;  %s1748_s13 = smov 0  }
   0x5   :  { %s1750_s14 = smov 0   ;;  %s1752_s15 = smov 0  }
   0x6   :  { %s1754_s16 = smov 0   ;;  %s1756_s17 = smov 0  }
   0x7 LB: > { %s1070_s18 = sadd.s32 4294967295, %s1715_s17   ;;  %s1071_s19 = sadd.s32 4294967294, %s1715_s17   ;;  %s1715_s17 = sphi %s1756_s17, %s20_s17   ;;  %s1711_s16 = sphi %s1754_s16, %s2083_s16   ;;  %s1707_s15 = sphi %s1752_s15, %s2082_s15   ;;  %s1703_s14 = sphi %s1750_s14, %s2081_s14   ;;  %s1699_s13 = sphi %s1748_s13, %s2080_s13   ;;  %s1695_s12 = sphi %s1746_s12, %s2079_s12  }
   0x8   : > { %p61_p0 = scmp.ne.s32.totalorder %s1699_s13, %s1695_s12  ;;  %p1780_p1 = scmp.eq.s32.totalorder %s1070_s18, 0 }
   0x9   : > { %p1784_p2 = scmp.eq.s32.totalorder %s1070_s18, 1  ;;  %p147_p3 = scmp.eq.s32.totalorder %s1071_s19, 1 }
   0xa   : > { %s2064_s20 = scalar_select %p1780_p1, 1, 0 }
   0xb   : > { %s2065_s21 = scalar_select %p1784_p2, 1, 0 }
   0xc   : > { %p1790_p4 = por %p1780_p1, %p61_p0  ;;  %p1072_p5 = scmp.ge.s32.totalorder %s1715_s17, 1 }
   0xd   : > { %p1795_p6 = por %p147_p3, %p61_p0  ;;  %p154_p7 = scmp.lt.s32.totalorder %s1715_s17, 3 }
   0xe   : > { %s2066_s22 = scalar_select %p1790_p4, 1, 0 }
   0xf   : > { %s2067_s23 = scalar_select %p1795_p6, 1, 0 }
  0x10   : > { %p1800_p8 = pnand %p1072_p5, %p154_p7  ;;  %s1717_s25 = smov [#allocation5]  }
  0x11   : > { %s170_s26 = sshll.u32 %s1717_s25, 4  ;;  %s39_s28 = sadd.s32 1, %s1711_s16  ;;  %s171_s26 = int_to_ptr.vmem [resolvable:$true] %s170_s26 }
  0x12   : > { %s2068_s24 = scalar_select %p1800_p8, 1, 0 }
  0x13   : > { %p1436_p9 = pneg %p1800_p8  ;;  %s1571_s4 = scalar_lea.hbm %s2057_s1, 2048 }
  0x14   : > { %p1572_p12 = scmp.ne.s32.totalorder %s2057_s1, %s1571_s4  ;;  %p1578_p5 = scmp.lt.u32.totalorder %s1571_s4, %s2057_s1 }
  0x15   : > { %p1809_p11 = pnand %p1436_p9, %p1780_p1 }
  0x17   : > { %p1573_p13 = pneg %p1809_p11 }
  0x19   : > { %p1574_p0 = pnand %p1573_p13, %p1572_p12 }
  0x1b   : > { %p1575_p3 = pneg %p1574_p0 }
  0x1d   : > { %p1580_p7 = pnand %p1578_p5, %p1575_p3 }
  0x1f   : > { %1583 = shalt.err (!%p1580_p7)
}
  0x20   : > { %s1584_s9 = scalar_lea.vmem %s171_s26, 2048  ;;  %p1592_p1 = scmp.lt.s32.totalorder %s171_s26, %s171_s26 }
  0x21   : > { %p1585_p9 = scmp.ne.s32.totalorder %s171_s26, %s1584_s9  ;;  %p1593_p4 = scmp.lt.s32.totalorder %s1584_s9, %s1584_s9 }
  0x23   : > { %p1587_p10 = pnand %p1585_p9, %p1573_p13  ;;  %p1594_p8 = por %p1593_p4, %p1592_p1 }
  0x25   : > { %p1588_p6 = pneg %p1587_p10 }
  0x27   : > { %p1595_p2 = pnand %p1594_p8, %p1588_p6 }
  0x29   : > { %1598 = shalt.err (!%p1595_p2)
}
  0x2a   : > { %s1718_s10 = smov 64   ;;  %s1719_s11 = smov 4  }
  0x2b   : > { %1439 = dma.hbm_to_vmem [thread:$0]  (!%p1809_p11), %s2057_s1, 2048, %s171_s26, [#allocation6], %s1718_s10, %s1718_s10, %s1719_s11  }
  0x2c   : > { %p41_p1 = scmp.ge.s32.totalorder %s39_s28, 2  ;;  %s48_s25 = sadd.s32 1, %s1703_s14 }
  0x2d   : > { %p55_p2 = scmp.ne.s32.totalorder %s1703_s14, %s1699_s13  ;;  %p56_p4 = scmp.eq.s32.totalorder %s1715_s17, 0 }
  0x2e   : > { %s2085_s28 = smov (%p41_p1, %s39_s28), 0  ;;  %p2071_p8 = scmp.ne.s32.totalorder %s2065_s21, 0 }
  0x2f   : > { %p1836_p6 = por %p56_p4, %p55_p2  ;;  %s43_s27 = ssub.s32 %s1711_s16, %s2085_s28 }
  0x30   : > { %p1842_p10 = por %p2071_p8, %p55_p2  ;;  %p1449_p12 = scmp.lt.s32.totalorder %s1715_s17, 2 }
  0x31   : > { %p46_p11 = scmp.eq.s32.totalorder %s43_s27, 0  ;;  %s190_s26 = sand.u32 1, %s1703_s14  }
  0x32   : > { %s1076_s4 = sshll.u32 %s190_s26, 8  ;;  %s1171_s6 = sshll.u32 %s1711_s16, 12 }
  0x33   : > { %s1851_s5 = scalar_select %p46_p11, %s1703_s14, %s48_s25  }
  0x34   : > { %s1857_s9 = scalar_lea.hbm %s2056_s0, %s1171_s6  ;;  %s194_s21 = scalar_lea.vmem [#allocation2], %s1076_s4 }
  0x35   : > { %s204_s10 = sshll.u32 %s194_s21, 4  ;;  %p1863_p13 = pnand %p1449_p12, %p1836_p6  ;;  %s1859_s10 = int_to_ptr.vmem [resolvable:$true] %s204_s10 }
  0x36   : > { %s1867_s18 = scalar_lea.sflag [#allocation3], %s190_s26  ;;  %s1599_s19 = scalar_lea.hbm %s1857_s9, 4096 }
  0x37   : > { %p1600_p0 = scmp.ne.s32.totalorder %s1857_s9, %s1599_s19  ;;  %p1601_p3 = pneg %p1863_p13 }
  0x38   : > { %s1604_s29 = scalar_lea.hbm %s2056_s0, 8192  ;;  %p1605_p9 = scmp.lt.u32.totalorder %s1857_s9, %s2056_s0 }
  0x39   : > { %p1602_p5 = pnand %p1601_p3, %p1600_p0  ;;  %p1606_p1 = scmp.lt.u32.totalorder %s1604_s29, %s1599_s19 }
  0x3a   : > { %p1608_p4 = scmp.lt.u32.totalorder %s1599_s19, %s1857_s9 }
  0x3b   : > { %p1603_p7 = pneg %p1602_p5  ;;  %p1607_p2 = por %p1606_p1, %p1605_p9 }
  0x3d   : > { %p1609_p6 = por %p1608_p4, %p1607_p2 }
  0x3f   : > { %p1610_p8 = pnand %p1609_p6, %p1603_p7 }
  0x41   : > { %1613 = shalt.err (!%p1610_p8)
}
  0x42   : > { %s1614_s26 = scalar_lea.vmem %s1859_s10, 4096  ;;  %s1720_s7 = smov [#allocation2]  }
  0x43   : > { %p1615_p12 = scmp.ne.s32.totalorder %s1859_s10, %s1614_s26  ;;  %s1619_s8 = sshll.u32 %s1720_s7, 4  ;;  %s1620_s8 = int_to_ptr.vmem [resolvable:$false] %s1619_s8 }
  0x44   : > { %s1621_s21 = scalar_lea.vmem %s1620_s8, 8192  ;;  %p1622_p5 = scmp.lt.s32.totalorder %s1859_s10, %s1620_s8 }
  0x45   : > { %p1617_p11 = pnand %p1615_p12, %p1601_p3  ;;  %p1623_p9 = scmp.lt.s32.totalorder %s1621_s21, %s1614_s26 }
  0x47   : > { %p1618_p0 = pneg %p1617_p11  ;;  %p1624_p1 = por %p1623_p9, %p1622_p5 }
  0x49   : > { %p1625_p2 = pnand %p1624_p1, %p1618_p0 }
  0x4b   : > { %1628 = shalt.err (!%p1625_p2)
}
  0x4c   : > { %s1721_s19 = smov 128   ;;  %s1722_s25 = smov 8  }
  0x4d   : > { %1443 = dma.hbm_to_vmem [thread:$0]  (!%p1863_p13), %s1857_s9, 4096, %s1859_s10, %s1867_s18, %s1721_s19, %s1721_s19, %s1722_s25  }
  0x4e   : > { %p2074_p3 = scmp.ne.s32.totalorder %s2068_s24, 0 }
  0x4f   : > { %s1898_s27 = sand.u32 (!%p2074_p3), 1, %s1699_s13   ;;  %p2075_p7 = scmp.ne.s32.totalorder (!%p2074_p3), %s2066_s22, 0 }
  0x50   : > { %216 = sbr.rel (%p2074_p3) target bundleno = 419 (0x1a3), region = 32  ;;  %s1081_s29 = sshll.u32 (!%p2074_p3), %s1898_s27, 8 }
  0x51   : > { %s219_s4 = scalar_lea.sflag (!%p2074_p3), [#allocation3], %s1898_s27  ;;  %s1902_s6 = scalar_lea.vmem (!%p2074_p3), [#allocation2], %s1081_s29 }
  0x57   : > { %1682 = dma.done.wait (%p2075_p7), %s219_s4, 4096  }
  0x58   : > { %1684 = vsyncadd (%p2075_p7), %s219_s4, 4294963200  ;;  %p2076_p13 = scmp.ne.s32.totalorder %s2064_s20, 0 }
  0x5a   : > { %1686 = dma.done.wait (%p2076_p13), [#allocation6], 2048  }
  0x5b   : > { %1688 = vsyncadd (%p2076_p13), [#allocation6], 4294965248  ;;  %v1507_v0 = vld [vmem:[#allocation5 + $0x40] sm:$0xff]   ;;  %v1509_v2 = vld [vmem:[#allocation5 + $0x48] sm:$0xff]   ;;  %s1083_s24 = sshll.u32 %s1898_s27, 7  ;;  %s1204_s10 = sshll.u32 %s1707_s15, 11 }
  0x5c   : > { %v1508_v1 = vld [vmem:[#allocation5] sm:$0xff]   ;;  %1300 = vmatprep.subr.bf16.mxu0 %v1507_v0  ;;  %1412 = vmatprep.subr.bf16.mxu1 %v1507_v0  ;;  %v1510_v3 = vld [vmem:[#allocation5 + $0x8] sm:$0xff]   ;;  %v1511_v4 = vld [vmem:[#allocation5 + $0x50] sm:$0xff]   ;;  %s1954_s9 = scalar_lea.vmem [#allocation7], %s1083_s24  ;;  %s2003_s7 = scalar_lea.hbm %s2059_s3, %s1204_s10 }
  0x5d   : > { %1301 = vmatpush3.bf16.msra.mxu0 %v1508_v1  ;;  %1420 = vmatpush3.bf16.msra.mxu1 %v1508_v1  ;;  %v1512_v5 = vld [vmem:[#allocation5 + $0x10] sm:$0xff]   ;;  %v1513_v6 = vld [vmem:[#allocation5 + $0x58] sm:$0xff]   ;;  %v1515_v8 = vld [vmem:[#allocation5 + $0x60] sm:$0xff]   ;;  %s955_s11 = sshll.u32 %s1954_s9, 4  ;;  %s941_s15 = scalar_lea.sflag [#allocation4], %s1898_s27  ;;  %s2005_s11 = int_to_ptr.vmem [resolvable:$true] %s955_s11 }
  0x5e   : > { %1302 = vmatprep.subr.bf16.mxu0 %v1509_v2  ;;  %1413 = vmatprep.subr.bf16.mxu1 %v1509_v2  ;;  %v1514_v7 = vld [vmem:[#allocation5 + $0x18] sm:$0xff]   ;;  %v1516_v9 = vld [vmem:[#allocation5 + $0x20] sm:$0xff]   ;;  %v1517_v10 = vld [vmem:[#allocation5 + $0x68] sm:$0xff]   ;;  %s1629_s8 = scalar_lea.vmem %s2005_s11, 2048  ;;  %s1723_s21 = smov [#allocation7]  }
  0x5f   : > { %v1525_v11 = vld [vmem:[%s1902_s6 + $0x4] ss:$8 sps:$4 sm:$0xff]   ;;  %v1519_v14 = vld [vmem:[#allocation5 + $0x70] sm:$0xff]   ;;  %v1521_v16 = vld [vmem:[#allocation5 + $0x78] sm:$0xff]   ;;  %p1630_p4 = scmp.ne.s32.totalorder %s2005_s11, %s1629_s8  ;;  %s1633_s19 = sshll.u32 %s1723_s21, 4  ;;  %s1634_s19 = int_to_ptr.vmem [resolvable:$false] %s1633_s19 }
  0x60   : > { %v1528_v12 = vld [vmem:[%s1902_s6 + $0x84] ss:$8 sps:$4 sm:$0xff]   ;;  %619 = vmatprep.mubr.bf16.mxu0 %v1525_v11  ;;  %v1520_v15 = vld [vmem:[#allocation5 + $0x30] sm:$0xff]   ;;  %v1522_v17 = vld [vmem:[#allocation5 + $0x38] sm:$0xff]   ;;  %s1635_s25 = scalar_lea.vmem %s1634_s19, 4096  ;;  %p1636_p12 = scmp.lt.s32.totalorder %s2005_s11, %s1634_s19 }
  0x61   : > { %1303 = vmatpush3.bf16.msra.mxu0 %v1510_v3  ;;  %1421 = vmatpush3.bf16.msra.mxu1 %v1510_v3  ;;  %v1518_v13 = vld [vmem:[#allocation5 + $0x28] sm:$0xff]   ;;  %v1529_v20 = vld [vmem:[%s1902_s6 + $0x14] ss:$8 sps:$4 sm:$0xff]   ;;  %v1533_v22 = vld [vmem:[%s1902_s6 + $0x10] ss:$8 sps:$4 sm:$0xff]   ;;  %p1631_p6 = pnand %p1630_p4, %p1842_p10  ;;  %p1637_p11 = scmp.lt.s32.totalorder %s1635_s25, %s1629_s8 }
  0x62   : > { %1304 = vmatprep.subr.bf16.mxu0 %v1511_v4  ;;  %1414 = vmatprep.subr.bf16.mxu1 %v1511_v4  ;;  %v1523_v18 = vld [vmem:[%s1902_s6] ss:$8 sps:$4 sm:$0xff]   ;;  %v1531_v21 = vld [vmem:[%s1902_s6 + $0x94] ss:$8 sps:$4 sm:$0xff]   ;;  %v1534_v23 = vld [vmem:[%s1902_s6 + $0x90] ss:$8 sps:$4 sm:$0xff]  }
  0x63   : > { %683 = vmatprep.mubr.bf16.mxu1 %v1528_v12  ;;  %v1526_v19 = vld [vmem:[%s1902_s6 + $0x80] ss:$8 sps:$4 sm:$0xff]   ;;  %v1535_v24 = vld [vmem:[%s1902_s6 + $0x24] ss:$8 sps:$4 sm:$0xff]   ;;  %v1541_v28 = vld [vmem:[%s1902_s6 + $0x34] ss:$8 sps:$4 sm:$0xff]   ;;  %p1632_p8 = pneg %p1631_p6  ;;  %p1638_p0 = por %p1637_p11, %p1636_p12 }
  0x64   : > { %v1537_v25 = vld [vmem:[%s1902_s6 + $0xa4] ss:$8 sps:$4 sm:$0xff]   ;;  %v1539_v26 = vld [vmem:[%s1902_s6 + $0x20] ss:$8 sps:$4 sm:$0xff]   ;;  %v1543_v29 = vld [vmem:[%s1902_s6 + $0xb4] ss:$8 sps:$4 sm:$0xff]  }
  0x65   : > { %1305 = vmatpush3.bf16.msra.mxu0 %v1512_v5  ;;  %1422 = vmatpush3.bf16.msra.mxu1 %v1512_v5  ;;  %v1540_v27 = vld [vmem:[%s1902_s6 + $0xa0] ss:$8 sps:$4 sm:$0xff]   ;;  %v1545_v30 = vld [vmem:[%s1902_s6 + $0x30] ss:$8 sps:$4 sm:$0xff]   ;;  %v1547_v32 = vld [vmem:[%s1902_s6 + $0x44] ss:$8 sps:$4 sm:$0xff]   ;;  %p1639_p5 = pnand %p1638_p0, %p1632_p8 }
  0x66   : > { %1306 = vmatprep.subr.bf16.mxu0 %v1513_v6  ;;  %1415 = vmatprep.subr.bf16.mxu1 %v1513_v6  ;;  %v1546_v31 = vld [vmem:[%s1902_s6 + $0xb0] ss:$8 sps:$4 sm:$0xff]   ;;  %v1549_v33 = vld [vmem:[%s1902_s6 + $0xc4] ss:$8 sps:$4 sm:$0xff]   ;;  %v1551_v34 = vld [vmem:[%s1902_s6 + $0x40] ss:$8 sps:$4 sm:$0xff]  }
  0x67   : > { %v1552_v35 = vld [vmem:[%s1902_s6 + $0xc0] ss:$8 sps:$4 sm:$0xff]   ;;  %v1553_v36 = vld [vmem:[%s1902_s6 + $0x54] ss:$8 sps:$4 sm:$0xff]   ;;  %v1557_v38 = vld [vmem:[%s1902_s6 + $0x50] ss:$8 sps:$4 sm:$0xff]  }
  0x68   : > { %v1555_v37 = vld [vmem:[%s1902_s6 + $0xd4] ss:$8 sps:$4 sm:$0xff]   ;;  %v1558_v39 = vld [vmem:[%s1902_s6 + $0xd0] ss:$8 sps:$4 sm:$0xff]   ;;  %v1559_v40 = vld [vmem:[%s1902_s6 + $0x64] ss:$8 sps:$4 sm:$0xff]  }
  0x69   : > { %1307 = vmatpush3.bf16.msra.mxu0 %v1514_v7  ;;  %1423 = vmatpush3.bf16.msra.mxu1 %v1514_v7  ;;  %v1561_v41 = vld [vmem:[%s1902_s6 + $0xe4] ss:$8 sps:$4 sm:$0xff]   ;;  %v1563_v42 = vld [vmem:[%s1902_s6 + $0x60] ss:$8 sps:$4 sm:$0xff]   ;;  %v1565_v44 = vld [vmem:[%s1902_s6 + $0x74] ss:$8 sps:$4 sm:$0xff]  }
  0x6a   : > { %1308 = vmatprep.subr.bf16.mxu0 %v1515_v8  ;;  %1416 = vmatprep.subr.bf16.mxu1 %v1515_v8  ;;  %v1564_v43 = vld [vmem:[%s1902_s6 + $0xe0] ss:$8 sps:$4 sm:$0xff]   ;;  %v1567_v45 = vld [vmem:[%s1902_s6 + $0xf4] ss:$8 sps:$4 sm:$0xff]   ;;  %v1569_v46 = vld [vmem:[%s1902_s6 + $0x70] ss:$8 sps:$4 sm:$0xff]  }
  0x6b   : > { %v1570_v47 = vld [vmem:[%s1902_s6 + $0xf0] ss:$8 sps:$4 sm:$0xff]   ;;  %v1947_v50 = vld [vmem:[%s2058_s2] ss:$0 sm:$0xff] }
  0x6d   : > { %1309 = vmatpush3.bf16.msra.mxu0 %v1516_v9  ;;  %1424 = vmatpush3.bf16.msra.mxu1 %v1516_v9 }
  0x6e   : > { %1310 = vmatprep.subr.bf16.mxu0 %v1517_v10  ;;  %1417 = vmatprep.subr.bf16.mxu1 %v1517_v10 }
  0x71   : > { %1311 = vmatpush3.bf16.msra.mxu0 %v1518_v13  ;;  %1425 = vmatpush3.bf16.msra.mxu1 %v1518_v13 }
  0x72   : > { %1312 = vmatprep.subr.bf16.mxu0 %v1519_v14  ;;  %1418 = vmatprep.subr.bf16.mxu1 %v1519_v14 }
  0x75   : > { %1313 = vmatpush3.bf16.msra.mxu0 %v1520_v15  ;;  %1426 = vmatpush3.bf16.msra.mxu1 %v1520_v15 }
  0x76   : > { %1314 = vmatprep.subr.bf16.mxu0 %v1521_v16  ;;  %1419 = vmatprep.subr.bf16.mxu1 %v1521_v16 }
  0x79   : > { %1315 = vmatpush3.bf16.msra.mxu0 %v1522_v17  ;;  %1427 = vmatpush3.bf16.msra.mxu1 %v1522_v17 }
  0x7c   : > { %620 = vmatmul.mubr.bf16.vlgmr.msra.gmra.mrb[0].mxu0 %v1523_v18  ;;  %684 = vmatmul.mubr.bf16.vlgmr.msra.gmra.mrb[0].mxu1 %v1526_v19 }
  0x7d   : > { %627 = vmatprep.mubr.bf16.mxu0 %v1529_v20  ;;  %691 = vmatprep.mubr.bf16.mxu1 %v1531_v21 }
  0x84   : > { %628 = vmatmul.mubr.bf16.gmra.mrb[4].mxu0 %v1533_v22  ;;  %692 = vmatmul.mubr.bf16.gmra.mrb[4].mxu1 %v1534_v23 }
  0x85   : > { %635 = vmatprep.mubr.bf16.mxu0 %v1535_v24  ;;  %699 = vmatprep.mubr.bf16.mxu1 %v1537_v25 }
  0x8c   : > { %636 = vmatmul.mubr.bf16.gmra.mrb[8].mxu0 %v1539_v26  ;;  %700 = vmatmul.mubr.bf16.gmra.mrb[8].mxu1 %v1540_v27 }
  0x8d   : > { %643 = vmatprep.mubr.bf16.mxu0 %v1541_v28  ;;  %707 = vmatprep.mubr.bf16.mxu1 %v1543_v29 }
  0x94   : > { %644 = vmatmul.mubr.bf16.gmra.mrb[12].mxu0 %v1545_v30  ;;  %708 = vmatmul.mubr.bf16.gmra.mrb[12].mxu1 %v1546_v31 }
  0x95   : > { %651 = vmatprep.mubr.bf16.mxu0 %v1547_v32  ;;  %715 = vmatprep.mubr.bf16.mxu1 %v1549_v33 }
  0x9c   : > { %652 = vmatmul.mubr.bf16.gmra.mrb[16].mxu0 %v1551_v34  ;;  %716 = vmatmul.mubr.bf16.gmra.mrb[16].mxu1 %v1552_v35 }
  0x9d   : > { %659 = vmatprep.mubr.bf16.mxu0 %v1553_v36  ;;  %723 = vmatprep.mubr.bf16.mxu1 %v1555_v37 }
  0xa4   : > { %660 = vmatmul.mubr.bf16.gmra.mrb[20].mxu0 %v1557_v38  ;;  %724 = vmatmul.mubr.bf16.gmra.mrb[20].mxu1 %v1558_v39 }
  0xa5   : > { %667 = vmatprep.mubr.bf16.mxu0 %v1559_v40  ;;  %731 = vmatprep.mubr.bf16.mxu1 %v1561_v41 }
  0xac   : > { %668 = vmatmul.mubr.bf16.gmra.mrb[24].mxu0 %v1563_v42  ;;  %732 = vmatmul.mubr.bf16.gmra.mrb[24].mxu1 %v1564_v43 }
  0xad   : > { %675 = vmatprep.mubr.bf16.mxu0 %v1565_v44  ;;  %739 = vmatprep.mubr.bf16.mxu1 %v1567_v45 }
  0xb4   : > { %676 = vmatmul.mubr.bf16.gmra.mrb[28].mxu0 %v1569_v46  ;;  %740 = vmatmul.mubr.bf16.gmra.mrb[28].mxu1 %v1570_v47 }
 0x14f   : > { %v1316_v48 = vpop.f32.mrb[0].mxu0  ;;  %v1364_v49 = vpop.f32.mrb[0].mxu1 }
 0x150   : > { %v1317_v51 = vpop.f32.mrb[1].mxu0  ;;  %v1365_v52 = vpop.f32.mrb[1].mxu1 }
 0x151   : > { %v1318_v53 = vadd.f32 %v1317_v51, %v1316_v48  ;;  %v1366_v54 = vadd.f32 %v1365_v52, %v1364_v49  ;;  %v1319_v55 = vpop.f32.mrb[2].mxu0  ;;  %v1367_v56 = vpop.f32.mrb[2].mxu1 }
 0x152   : > { %v1320_v57 = vpop.f32.mrb[3].mxu0  ;;  %v1368_v58 = vpop.f32.mrb[3].mxu1 }
 0x153   : > { %v622_v59 = vadd.f32 %v1318_v53, %v1947_v50  ;;  %v686_v60 = vadd.f32 %v1366_v54, %v1947_v50  ;;  %v1321_v61 = vadd.f32 %v1320_v57, %v1319_v55  ;;  %v1369_v62 = vadd.f32 %v1368_v58, %v1367_v56 }
 0x155   : > { %v625_v63 = vadd.f32 %v1321_v61, %v1947_v50  ;;  %v689_v0 = vadd.f32 %v1369_v62, %v1947_v50  ;;  %v748_v1 = vmax.f32 %v622_v59, 0.0  ;;  %v764_v2 = vmax.f32 %v686_v60, 0.0 }
 0x157   : > { %v749_v3 = vmax.f32 %v625_v63, 0.0  ;;  %v765_v4 = vmax.f32 %v689_v0, 0.0  ;;  %v1322_v5 = vpop.f32.mrb[4].mxu0  ;;  %v1370_v6 = vpop.f32.mrb[4].mxu1 }
 0x158   : > { %v1323_v7 = vpop.f32.mrb[5].mxu0  ;;  %v1371_v8 = vpop.f32.mrb[5].mxu1 }
 0x159   : > { %v1208_v9 = vpack.c.bf16 %v749_v3, %v748_v1  ;;  %v1248_v10 = vpack.c.bf16 %v765_v4, %v764_v2  ;;  %v1324_v11 = vadd.f32 %v1323_v7, %v1322_v5  ;;  %v1372_v12 = vadd.f32 %v1371_v8, %v1370_v6  ;;  %v1325_v13 = vpop.f32.mrb[6].mxu0  ;;  %v1373_v14 = vpop.f32.mrb[6].mxu1 }
 0x15a   : > { %v1326_v15 = vpop.f32.mrb[7].mxu0  ;;  %v1374_v16 = vpop.f32.mrb[7].mxu1 }
 0x15b   : > { %1209 = vst [vmem:[%s1954_s9] sm:$0xff] %v1208_v9   ;;  %1292 = vst [vmem:[%s1954_s9 + $0x40] sm:$0xff] %v1248_v10   ;;  %v630_v17 = vadd.f32 %v1324_v11, %v1947_v50  ;;  %v694_v18 = vadd.f32 %v1372_v12, %v1947_v50  ;;  %v1327_v19 = vadd.f32 %v1326_v15, %v1325_v13 }
 0x15c   : > { %v1375_v20 = vadd.f32 %v1374_v16, %v1373_v14 }
 0x15d   : > { %v633_v21 = vadd.f32 %v1327_v19, %v1947_v50  ;;  %v750_v23 = vmax.f32 %v630_v17, 0.0  ;;  %v766_v24 = vmax.f32 %v694_v18, 0.0 }
 0x15e   : > { %v697_v22 = vadd.f32 %v1375_v20, %v1947_v50 }
 0x15f   : > { %v751_v25 = vmax.f32 %v633_v21, 0.0  ;;  %v1328_v27 = vpop.f32.mrb[8].mxu0  ;;  %v1376_v28 = vpop.f32.mrb[8].mxu1 }
 0x160   : > { %v767_v26 = vmax.f32 %v697_v22, 0.0  ;;  %v1329_v29 = vpop.f32.mrb[9].mxu0  ;;  %v1377_v30 = vpop.f32.mrb[9].mxu1 }
 0x161   : > { %v1213_v31 = vpack.c.bf16 %v751_v25, %v750_v23  ;;  %v1330_v33 = vadd.f32 %v1329_v29, %v1328_v27  ;;  %v1378_v34 = vadd.f32 %v1377_v30, %v1376_v28  ;;  %v1331_v35 = vpop.f32.mrb[10].mxu0  ;;  %v1379_v36 = vpop.f32.mrb[10].mxu1 }
 0x162   : > { %v1253_v32 = vpack.c.bf16 %v767_v26, %v766_v24  ;;  %v1332_v37 = vpop.f32.mrb[11].mxu0  ;;  %v1380_v38 = vpop.f32.mrb[11].mxu1 }
 0x163   : > { %1285 = vst [vmem:[%s1954_s9 + $0x8] sm:$0xff] %v1213_v31   ;;  %v638_v39 = vadd.f32 %v1330_v33, %v1947_v50  ;;  %v702_v40 = vadd.f32 %v1378_v34, %v1947_v50  ;;  %v1333_v41 = vadd.f32 %v1332_v37, %v1331_v35  ;;  %v1381_v42 = vadd.f32 %v1380_v38, %v1379_v36 }
 0x164   : > { %1293 = vst [vmem:[%s1954_s9 + $0x48] sm:$0xff] %v1253_v32  }
 0x165   : > { %v641_v43 = vadd.f32 %v1333_v41, %v1947_v50  ;;  %v705_v44 = vadd.f32 %v1381_v42, %v1947_v50  ;;  %v752_v45 = vmax.f32 %v638_v39, 0.0  ;;  %v768_v46 = vmax.f32 %v702_v40, 0.0 }
 0x167   : > { %v753_v47 = vmax.f32 %v641_v43, 0.0  ;;  %v769_v48 = vmax.f32 %v705_v44, 0.0  ;;  %v1334_v49 = vpop.f32.mrb[12].mxu0  ;;  %v1382_v51 = vpop.f32.mrb[12].mxu1 }
 0x168   : > { %v1335_v52 = vpop.f32.mrb[13].mxu0  ;;  %v1383_v53 = vpop.f32.mrb[13].mxu1 }
 0x169   : > { %v1218_v54 = vpack.c.bf16 %v753_v47, %v752_v45  ;;  %v1258_v55 = vpack.c.bf16 %v769_v48, %v768_v46  ;;  %v1336_v56 = vadd.f32 %v1335_v52, %v1334_v49  ;;  %v1384_v57 = vadd.f32 %v1383_v53, %v1382_v51  ;;  %v1337_v58 = vpop.f32.mrb[14].mxu0  ;;  %v1385_v59 = vpop.f32.mrb[14].mxu1 }
 0x16a   : > { %v1338_v60 = vpop.f32.mrb[15].mxu0  ;;  %v1386_v61 = vpop.f32.mrb[15].mxu1 }
 0x16b   : > { %1286 = vst [vmem:[%s1954_s9 + $0x10] sm:$0xff] %v1218_v54   ;;  %1294 = vst [vmem:[%s1954_s9 + $0x50] sm:$0xff] %v1258_v55   ;;  %v646_v62 = vadd.f32 %v1336_v56, %v1947_v50  ;;  %v710_v63 = vadd.f32 %v1384_v57, %v1947_v50  ;;  %v1339_v0 = vadd.f32 %v1338_v60, %v1337_v58 }
 0x16c   : > { %v1387_v1 = vadd.f32 %v1386_v61, %v1385_v59 }
 0x16d   : > { %v649_v2 = vadd.f32 %v1339_v0, %v1947_v50  ;;  %v754_v4 = vmax.f32 %v646_v62, 0.0  ;;  %v770_v5 = vmax.f32 %v710_v63, 0.0 }
 0x16e   : > { %v713_v3 = vadd.f32 %v1387_v1, %v1947_v50 }
 0x16f   : > { %v755_v6 = vmax.f32 %v649_v2, 0.0  ;;  %v1340_v8 = vpop.f32.mrb[16].mxu0  ;;  %v1388_v9 = vpop.f32.mrb[16].mxu1 }
 0x170   : > { %v771_v7 = vmax.f32 %v713_v3, 0.0  ;;  %v1341_v10 = vpop.f32.mrb[17].mxu0  ;;  %v1389_v11 = vpop.f32.mrb[17].mxu1 }
 0x171   : > { %v1223_v12 = vpack.c.bf16 %v755_v6, %v754_v4  ;;  %v1342_v14 = vadd.f32 %v1341_v10, %v1340_v8  ;;  %v1390_v15 = vadd.f32 %v1389_v11, %v1388_v9  ;;  %v1343_v16 = vpop.f32.mrb[18].mxu0  ;;  %v1391_v17 = vpop.f32.mrb[18].mxu1 }
 0x172   : > { %v1263_v13 = vpack.c.bf16 %v771_v7, %v770_v5  ;;  %v1344_v18 = vpop.f32.mrb[19].mxu0  ;;  %v1392_v19 = vpop.f32.mrb[19].mxu1 }
 0x173   : > { %1287 = vst [vmem:[%s1954_s9 + $0x18] sm:$0xff] %v1223_v12   ;;  %v654_v20 = vadd.f32 %v1342_v14, %v1947_v50  ;;  %v718_v21 = vadd.f32 %v1390_v15, %v1947_v50  ;;  %v1345_v22 = vadd.f32 %v1344_v18, %v1343_v16  ;;  %v1393_v23 = vadd.f32 %v1392_v19, %v1391_v17 }
 0x174   : > { %1295 = vst [vmem:[%s1954_s9 + $0x58] sm:$0xff] %v1263_v13  }
 0x175   : > { %v657_v24 = vadd.f32 %v1345_v22, %v1947_v50  ;;  %v721_v25 = vadd.f32 %v1393_v23, %v1947_v50  ;;  %v756_v26 = vmax.f32 %v654_v20, 0.0  ;;  %v772_v27 = vmax.f32 %v718_v21, 0.0 }
 0x177   : > { %v757_v28 = vmax.f32 %v657_v24, 0.0  ;;  %v773_v29 = vmax.f32 %v721_v25, 0.0  ;;  %v1346_v30 = vpop.f32.mrb[20].mxu0  ;;  %v1394_v31 = vpop.f32.mrb[20].mxu1 }
 0x178   : > { %v1347_v32 = vpop.f32.mrb[21].mxu0  ;;  %v1395_v33 = vpop.f32.mrb[21].mxu1 }
 0x179   : > { %v1228_v34 = vpack.c.bf16 %v757_v28, %v756_v26  ;;  %v1268_v35 = vpack.c.bf16 %v773_v29, %v772_v27  ;;  %v1348_v36 = vadd.f32 %v1347_v32, %v1346_v30  ;;  %v1396_v37 = vadd.f32 %v1395_v33, %v1394_v31  ;;  %v1349_v38 = vpop.f32.mrb[22].mxu0  ;;  %v1397_v39 = vpop.f32.mrb[22].mxu1 }
 0x17a   : > { %v1350_v40 = vpop.f32.mrb[23].mxu0  ;;  %v1398_v41 = vpop.f32.mrb[23].mxu1 }
 0x17b   : > { %1288 = vst [vmem:[%s1954_s9 + $0x20] sm:$0xff] %v1228_v34   ;;  %1296 = vst [vmem:[%s1954_s9 + $0x60] sm:$0xff] %v1268_v35   ;;  %v662_v42 = vadd.f32 %v1348_v36, %v1947_v50  ;;  %v726_v43 = vadd.f32 %v1396_v37, %v1947_v50  ;;  %v1351_v44 = vadd.f32 %v1350_v40, %v1349_v38 }
 0x17c   : > { %v1399_v45 = vadd.f32 %v1398_v41, %v1397_v39 }
 0x17d   : > { %v665_v46 = vadd.f32 %v1351_v44, %v1947_v50  ;;  %v758_v48 = vmax.f32 %v662_v42, 0.0  ;;  %v774_v49 = vmax.f32 %v726_v43, 0.0 }
 0x17e   : > { %v729_v47 = vadd.f32 %v1399_v45, %v1947_v50 }
 0x17f   : > { %v759_v51 = vmax.f32 %v665_v46, 0.0  ;;  %v1352_v53 = vpop.f32.mrb[24].mxu0  ;;  %v1400_v54 = vpop.f32.mrb[24].mxu1 }
 0x180   : > { %v775_v52 = vmax.f32 %v729_v47, 0.0  ;;  %v1353_v55 = vpop.f32.mrb[25].mxu0  ;;  %v1401_v56 = vpop.f32.mrb[25].mxu1 }
 0x181   : > { %v1233_v57 = vpack.c.bf16 %v759_v51, %v758_v48  ;;  %v1354_v59 = vadd.f32 %v1353_v55, %v1352_v53  ;;  %v1402_v60 = vadd.f32 %v1401_v56, %v1400_v54  ;;  %v1355_v61 = vpop.f32.mrb[26].mxu0  ;;  %v1403_v62 = vpop.f32.mrb[26].mxu1 }
 0x182   : > { %v1273_v58 = vpack.c.bf16 %v775_v52, %v774_v49  ;;  %v1356_v63 = vpop.f32.mrb[27].mxu0  ;;  %v1404_v0 = vpop.f32.mrb[27].mxu1 }
 0x183   : > { %1289 = vst [vmem:[%s1954_s9 + $0x28] sm:$0xff] %v1233_v57   ;;  %v670_v1 = vadd.f32 %v1354_v59, %v1947_v50  ;;  %v734_v2 = vadd.f32 %v1402_v60, %v1947_v50  ;;  %v1357_v3 = vadd.f32 %v1356_v63, %v1355_v61  ;;  %v1405_v4 = vadd.f32 %v1404_v0, %v1403_v62 }
 0x184   : > { %1297 = vst [vmem:[%s1954_s9 + $0x68] sm:$0xff] %v1273_v58  }
 0x185   : > { %v673_v5 = vadd.f32 %v1357_v3, %v1947_v50  ;;  %v737_v6 = vadd.f32 %v1405_v4, %v1947_v50  ;;  %v760_v7 = vmax.f32 %v670_v1, 0.0  ;;  %v776_v8 = vmax.f32 %v734_v2, 0.0 }
 0x187   : > { %v761_v9 = vmax.f32 %v673_v5, 0.0  ;;  %v777_v10 = vmax.f32 %v737_v6, 0.0  ;;  %v1358_v11 = vpop.f32.mrb[28].mxu0  ;;  %v1406_v12 = vpop.f32.mrb[28].mxu1 }
 0x188   : > { %v1359_v13 = vpop.f32.mrb[29].mxu0  ;;  %v1407_v14 = vpop.f32.mrb[29].mxu1 }
 0x189   : > { %v1238_v15 = vpack.c.bf16 %v761_v9, %v760_v7  ;;  %v1278_v16 = vpack.c.bf16 %v777_v10, %v776_v8  ;;  %v1360_v17 = vadd.f32 %v1359_v13, %v1358_v11  ;;  %v1408_v18 = vadd.f32 %v1407_v14, %v1406_v12  ;;  %v1361_v19 = vpop.f32.mrb[30].mxu0  ;;  %v1409_v20 = vpop.f32.mrb[30].mxu1 }
 0x18a   : > { %v1362_v21 = vpop.f32.mrb[31].mxu0  ;;  %v1410_v22 = vpop.f32.mrb[31].mxu1 }
 0x18b   : > { %1290 = vst [vmem:[%s1954_s9 + $0x30] sm:$0xff] %v1238_v15   ;;  %1298 = vst [vmem:[%s1954_s9 + $0x70] sm:$0xff] %v1278_v16   ;;  %v678_v23 = vadd.f32 %v1360_v17, %v1947_v50  ;;  %v742_v24 = vadd.f32 %v1408_v18, %v1947_v50  ;;  %v1363_v25 = vadd.f32 %v1362_v21, %v1361_v19 }
 0x18c   : > { %v1411_v26 = vadd.f32 %v1410_v22, %v1409_v20 }
 0x18d   : > { %v681_v27 = vadd.f32 %v1363_v25, %v1947_v50  ;;  %v762_v29 = vmax.f32 %v678_v23, 0.0  ;;  %v778_v30 = vmax.f32 %v742_v24, 0.0 }
 0x18e   : > { %v745_v28 = vadd.f32 %v1411_v26, %v1947_v50 }
 0x18f   : > { %v763_v31 = vmax.f32 %v681_v27, 0.0 }
 0x190   : > { %v779_v32 = vmax.f32 %v745_v28, 0.0 }
 0x191   : > { %v1243_v33 = vpack.c.bf16 %v763_v31, %v762_v29 }
 0x192   : > { %v1283_v34 = vpack.c.bf16 %v779_v32, %v778_v30 }
 0x193   : > { %1291 = vst [vmem:[%s1954_s9 + $0x38] sm:$0xff] %v1243_v33  }
 0x194   : > { %1299 = vst [vmem:[%s1954_s9 + $0x78] sm:$0xff] %v1283_v34  }
 0x195   : > { %1642 = shalt.err (!%p1639_p5)
}
 0x196   : > { %s1643_s29 = scalar_lea.hbm %s2003_s7, 2048  ;;  %s1647_s20 = scalar_lea.hbm %s2059_s3, 4096 }
 0x197   : > { %p1644_p9 = scmp.ne.s32.totalorder %s2003_s7, %s1643_s29  ;;  %p1648_p3 = scmp.lt.u32.totalorder %s2003_s7, %s2059_s3 }
 0x198   : > { %p1649_p7 = scmp.lt.u32.totalorder %s1647_s20, %s1643_s29  ;;  %p1651_p4 = scmp.lt.u32.totalorder %s1643_s29, %s2003_s7 }
 0x199   : > { %p1645_p1 = pnand %p1644_p9, %p1842_p10 }
 0x19a   : > { %p1650_p13 = por %p1649_p7, %p1648_p3 }
 0x19b   : > { %p1646_p2 = pneg %p1645_p1 }
 0x19c   : > { %p1652_p6 = por %p1651_p4, %p1650_p13 }
 0x19e   : > { %p1653_p8 = pnand %p1652_p6, %p1646_p2 }
 0x1a0   : > { %1656 = shalt.err (!%p1653_p8)
}
 0x1a1   : > { %s1724_s9 = smov 64   ;;  %s1725_s10 = smov 4  }
 0x1a2   : > { %1434 = dma.vmem_to_hbm [thread:$0]  (%p1842_p10), %s2005_s11, 2048, %s2003_s7, %s941_s15, %s1724_s9, %s1724_s9, %s1725_s10  }
 0x1a3 PF: > { %s970_s18 = sand.u32 1, %s1695_s12   ;;  %p2077_p12 = scmp.ne.s32.totalorder %s2067_s23, 0 }
 0x1a4   : > { %p2078_p11 = scmp.ge.s32.totalorder %s1715_s17, 2  ;;  %s971_s26 = scalar_lea.sflag [#allocation4], %s970_s18 }
 0x1a6   : > { %p1445_p0 = pnand %p2078_p11, %p2077_p12 }
 0x1a8   : > { %1690 = dma.done.wait (!%p1445_p0), %s971_s26, 2048  }
 0x1a9   : > { %1692 = vsyncadd (!%p1445_p0), %s971_s26, 4294965248  ;;  %s20_s17 = sadd.s32 1, %s1715_s17   ;;  %s2079_s12 = smov %s1699_s13 }
 0x1aa   : > { %p17_p5 = scmp.ge.s32.totalorder %s20_s17, 4   ;;  %s2080_s13 = smov %s1703_s14 }
 0x1ab   : > { %s2081_s14 = smov %s1851_s5  ;;  %s2082_s15 = smov %s1711_s16 }
 0x1ac   : > { %s2083_s16 = smov %s2085_s28  ;;  %19 = sbr.rel (!%p17_p5) target bundleno = 7 (0x7), region = 85 }
 0x1b3   :  { %976 = vsyncpa [#allocation3], 1 }
 0x1b4   :  { %978 = vsyncpa [#allocation3 + $0x1], 1 }
 0x1b5   :  { %979 = vsyncpa [#allocation6], 1 }
 0x1b6   :  { %980 = vsyncpa [#allocation4], 1 }
 0x1b7   :  { %982 = vsyncpa [#allocation4 + $0x1], 1 }

</bundles_post_ra>
